<compile_context>
chip_gen: v6e
topology: v6e:2x2x1
jax: 0.10.0
libtpu: 0.0.40
codegen_flags: <defaults>
</compile_context>

<pallas_src>
import jax
import jax.numpy as jnp
from jax.experimental import pallas as pl
from jax.experimental.pallas import tpu as pltpu


def _round_up(x: int, m: int) -> int:
    return ((x + m - 1) // m) * m


def pooling_head_kernel(x_ref, w_ref, b_ref, o_ref):
    # x_ref: (tm, Kp)   rows of hidden states
    # w_ref: (tn, Kp)   weight tile in PyTorch (out, in) layout
    # b_ref: (1, tn)    bias tile
    # o_ref: (tm, tn)
    y = jax.lax.dot_general(
        x_ref[...], w_ref[...],
        dimension_numbers=(((1,), (1,)), ((), ())),   # x @ W^T, no transpose in HBM
        preferred_element_type=jnp.float32,
    )
    y = y + b_ref[...]                                # broadcast bias over rows
    o_ref[...] = jnp.tanh(y).astype(o_ref.dtype)


def pooling_head(hidden_states, weight, bias, *, tm=256, tn=512):
    """hidden_states: [B, S, input_dim]; weight: [inner_dim, input_dim] (PyTorch layout);
    bias: [inner_dim]. Returns [B, S, inner_dim]."""
    B, S, K = hidden_states.shape
    N = weight.shape[0]
    dtype = hidden_states.dtype

    M = B * S
    x = hidden_states.reshape(M, K)

    # ---- pick tile sizes (sublane / lane aligned) ----
    tm_eff = min(tm, _round_up(M, 8))
    tm_eff = _round_up(tm_eff, 8)
    Np_min = _round_up(N, 128)
    tn_eff = min(_round_up(tn, 128), Np_min)

    # ---- pad to exact multiples of the tiles (zero padding is matmul/tanh-safe,
    #      padded rows/cols are sliced off afterwards) ----
    Mp = _round_up(M, tm_eff)
    Kp = _round_up(K, 128)
    Np = _round_up(Np_min, tn_eff)

    x_p = jnp.pad(x, ((0, Mp - M), (0, Kp - K)))
    w_p = jnp.pad(weight, ((0, Np - N), (0, Kp - K)))
    b_p = jnp.pad(bias, (0, Np - N)).reshape(1, Np)

    grid = (Mp // tm_eff, Np // tn_eff)

    # ---- conservative VMEM budget: double-buffered x, weight, bias and output tiles ----
    itemsize = jnp.dtype(dtype).itemsize
    needed = 2 * itemsize * (tm_eff * Kp + tn_eff * Kp + tm_eff * tn_eff + tn_eff)
    vmem_limit = int(min(max(2 * needed, 16 * 1024 * 1024), 48 * 1024 * 1024))

    out = pl.pallas_call(
        pooling_head_kernel,
        out_shape=jax.ShapeDtypeStruct((Mp, Np), dtype),
        grid_spec=pltpu.PrefetchScalarGridSpec(
            num_scalar_prefetch=0,
            grid=grid,
            in_specs=[
                pl.BlockSpec((tm_eff, Kp), lambda i, j: (i, 0)),
                pl.BlockSpec((tn_eff, Kp), lambda i, j: (j, 0)),
                pl.BlockSpec((1, tn_eff), lambda i, j: (0, j)),
            ],
            out_specs=pl.BlockSpec((tm_eff, tn_eff), lambda i, j: (i, j)),
        ),
        compiler_params=pltpu.CompilerParams(
            dimension_semantics=("parallel", "parallel"),
            vmem_limit_bytes=vmem_limit,
        ),
    )(x_p, w_p, b_p)

    return out[:M, :N].reshape(B, S, N)


if __name__ == "__main__":
    key = jax.random.PRNGKey(0)
    B, S = 2, 8
    input_dim, inner_dim = 32, 32

    k_x, k_w, k_b = jax.random.split(key, 3)
    x = jax.random.normal(k_x, (B, S, input_dim), dtype=jnp.float32)

    # Deterministic init mimicking nn.Linear: U(-1/sqrt(in), 1/sqrt(in))
    bound = 1.0 / (input_dim ** 0.5)
    weight = jax.random.uniform(k_w, (inner_dim, input_dim),
                                minval=-bound, maxval=bound, dtype=jnp.float32)
    bias = jax.random.uniform(k_b, (inner_dim,),
                              minval=-bound, maxval=bound, dtype=jnp.float32)

    out = pooling_head(x, weight, bias)
    out = jax.block_until_ready(out)

    # Reference check in plain JAX
    ref = jnp.tanh(x @ weight.T + bias)
    assert out.shape == (B, S, inner_dim)
    assert jnp.allclose(out, ref, atol=1e-5, rtol=1e-5)

    print("KERNEL_OK")
</pallas_src>

<mosaic_0001>
module attributes {stable_mosaic.version = 11 : i64} {
  func.func @pooling_head_kernel(%arg0: i32, %arg1: i32, %arg2: memref<16x128xf32, #tpu.memory_space<vmem>>, %arg3: memref<128x128xf32, #tpu.memory_space<vmem>>, %arg4: memref<1x128xf32, #tpu.memory_space<vmem>>, %arg5: memref<16x128xf32, #tpu.memory_space<vmem>>) attributes {dimension_semantics = [#tpu.dimension_semantics<parallel>, #tpu.dimension_semantics<parallel>], iteration_bounds = array<i64: 1, 1>, scalar_prefetch = 0 : i64, scratch_operands = 0 : i64, tpu.core_type = #tpu.core_type<tc>, window_params = [{transform_indices = @transform_0, window_bounds = array<i64: 16, 128>}, {transform_indices = @transform_1, window_bounds = array<i64: 128, 128>}, {transform_indices = @transform_2, window_bounds = array<i64: 1, 128>}, {transform_indices = @transform_3, window_bounds = array<i64: 16, 128>}]} {
    %c0 = arith.constant 0 : index
    %c0_0 = arith.constant 0 : index
    %0 = vector.load %arg2[%c0, %c0_0] : memref<16x128xf32, #tpu.memory_space<vmem>>, vector<16x128xf32>
    %c0_1 = arith.constant 0 : index
    %c0_2 = arith.constant 0 : index
    %1 = vector.load %arg3[%c0_1, %c0_2] : memref<128x128xf32, #tpu.memory_space<vmem>>, vector<128x128xf32>
    %cst = arith.constant dense<0.000000e+00> : vector<16x128xf32>
    %2 = tpu.matmul %0, %1, %cst {dimension_numbers = #tpu.dot_dimension_numbers<[1], [1], [0], [0], [0, 0, 1, 0], [], []>} : vector<16x128xf32>, vector<128x128xf32>, vector<16x128xf32> -> vector<16x128xf32>
    %c0_3 = arith.constant 0 : index
    %c0_4 = arith.constant 0 : index
    %3 = vector.load %arg4[%c0_3, %c0_4] : memref<1x128xf32, #tpu.memory_space<vmem>>, vector<1x128xf32>
    %4 = vector.broadcast %3 : vector<1x128xf32> to vector<16x128xf32>
    %5 = arith.addf %2, %4 : vector<16x128xf32>
    %6 = math.tanh %5 : vector<16x128xf32>
    %c0_5 = arith.constant 0 : index
    %c0_6 = arith.constant 0 : index
    %7 = vector.load %arg5[%c0_5, %c0_6] : memref<16x128xf32, #tpu.memory_space<vmem>>, vector<16x128xf32>
    tpu.vector_store %arg5[%c0_5, %c0_6], %6 {strides = array<i32>} : memref<16x128xf32, #tpu.memory_space<vmem>>, vector<16x128xf32>,
    return
  }
  func.func @transform_0(%arg0: i32, %arg1: i32) -> (i32, i32) {
    %c0_i32 = arith.constant 0 : i32
    %c0_i32_0 = arith.constant 0 : i32
    return %arg0, %c0_i32 : i32, i32
  }
  func.func @transform_1(%arg0: i32, %arg1: i32) -> (i32, i32) {
    %c0_i32 = arith.constant 0 : i32
    %c0_i32_0 = arith.constant 0 : i32
    return %arg1, %c0_i32 : i32, i32
  }
  func.func @transform_2(%arg0: i32, %arg1: i32) -> (i32, i32) {
    %c0_i32 = arith.constant 0 : i32
    %c0_i32_0 = arith.constant 0 : i32
    return %c0_i32, %arg1 : i32, i32
  }
  func.func @transform_3(%arg0: i32, %arg1: i32) -> (i32, i32) {
    %c0_i32 = arith.constant 0 : i32
    return %arg0, %arg1 : i32, i32
  }
}

</mosaic_0001>

<bundles_post_ra>
// kernel: tpu_custom_call.1
= control target key start
LH: loop header
LB: loop body
LE: loop exit
PB: predicated region body
PF: predicated region fallthrough
CT: control target
= control target key end

     0   :  { %8 = vsyncpa [#allocation3], 0  ;;  %s340_s0 = inlined_call_operand.hbm [shape: f32[16,128], index: 0, kind: input, shape index: {}]   ;;  %s341_s1 = inlined_call_operand.hbm [shape: f32[128,128], index: 1, kind: input, shape index: {}]   ;;  %s342_s2 = inlined_call_operand.vmem [shape: f32[1,128], index: 2, kind: input, shape index: {}]   ;;  %s343_s3 = inlined_call_operand.hbm [shape: f32[16,128], index: 3, kind: output, shape index: {}]  }
   0x1   :  { %9 = vsyncpa [#allocation6], 0 }
   0x2   :  { %10 = vsyncpa [#allocation4], 0  ;;  %s294_s12 = smov [#allocation2]  }
   0x3   :  { %s16_s13 = sshll.u32 %s294_s12, 4  ;;  %s17_s13 = int_to_ptr.vmem [resolvable:$true] %s16_s13 }
   0x4   :  { %s236_s14 = scalar_lea.vmem %s17_s13, 256  ;;  %p241_p1 = scmp.lt.s32.totalorder %s17_s13, %s17_s13 }
   0x5   :  { %p237_p0 = scmp.ne.s32.totalorder %s17_s13, %s236_s14  ;;  %p242_p2 = scmp.lt.s32.totalorder %s236_s14, %s236_s14 }
   0x7   :  { %p243_p3 = por %p242_p2, %p241_p1 }
   0x9   :  { %p244_p4 = pnand %p243_p3, %p237_p0 }
   0xb   :  { %247 = shalt.err (!%p244_p4)
}
   0xc   :  { %s295_s15 = smov 128   ;;  %s296_s16 = smov 8  }
   0xd   :  { %22 = dma.hbm_to_vmem [thread:$0]  %s340_s0, 256, %s17_s13, [#allocation3], %s295_s15, %s295_s15, %s296_s16  }
   0xe   :  { %s297_s19 = smov [#allocation5]  }
   0xf   :  { %s28_s20 = sshll.u32 %s297_s19, 4  ;;  %s29_s20 = int_to_ptr.vmem [resolvable:$true] %s28_s20 }
  0x10   :  { %s256_s21 = scalar_lea.vmem %s29_s20, 2048  ;;  %p261_p6 = scmp.lt.s32.totalorder %s29_s20, %s29_s20 }
  0x11   :  { %p257_p5 = scmp.ne.s32.totalorder %s29_s20, %s256_s21  ;;  %p262_p7 = scmp.lt.s32.totalorder %s256_s21, %s256_s21 }
  0x13   :  { %p263_p8 = por %p262_p7, %p261_p6 }
  0x15   :  { %p264_p9 = pnand %p263_p8, %p257_p5 }
  0x17   :  { %267 = shalt.err (!%p264_p9)
}
  0x18   :  { %34 = dma.hbm_to_vmem [thread:$0]  %s341_s1, 2048, %s29_s20, [#allocation6], %s295_s15, %s295_s15, %s296_s16  }
  0x19   :  { %288 = dma.done.wait [#allocation3], 256  }
  0x1a   :  { %289 = vsyncadd [#allocation3], 4294967040 }
  0x1b   :  { %290 = dma.done.wait [#allocation6], 2048  }
  0x1c   :  { %291 = vsyncadd [#allocation6], 4294965248  ;;  %v60_v0 = vld [vmem:[#allocation5 + $0x78] sm:$0xff]  ;;  %v59_v1 = vld [vmem:[#allocation5 + $0x70] sm:$0xff]  ;;  %s298_s24 = smov [#allocation7]  }
  0x1d   :  { %184 = vmatprep.subr.mxu0 %v60_v0  ;;  %v58_v2 = vld [vmem:[#allocation5 + $0x68] sm:$0xff]  ;;  %v43_v3 = vld [vmem:[#allocation2] sm:$0xff]  ;;  %v57_v4 = vld [vmem:[#allocation5 + $0x60] sm:$0xff]  ;;  %s152_s25 = sshll.u32 %s298_s24, 4  ;;  %s153_s25 = int_to_ptr.vmem [resolvable:$true] %s152_s25 }
  0x1e   :  { %185 = vmatpush3.xpose.msra.mxu0 %v60_v0  ;;  %216 = vmatprep.mubr.f32.mxu0 %v43_v3  ;;  %v56_v5 = vld [vmem:[#allocation5 + $0x58] sm:$0xff]  ;;  %v55_v6 = vld [vmem:[#allocation5 + $0x50] sm:$0xff]  ;;  %v54_v7 = vld [vmem:[#allocation5 + $0x48] sm:$0xff]  ;;  %s268_s26 = scalar_lea.vmem %s153_s25, 256  ;;  %p273_p11 = scmp.lt.s32.totalorder %s153_s25, %s153_s25 }
  0x1f   :  { %186 = vmatprep.subr.mxu0 %v59_v1  ;;  %v53_v8 = vld [vmem:[#allocation5 + $0x40] sm:$0xff]  ;;  %v52_v9 = vld [vmem:[#allocation5 + $0x38] sm:$0xff]  ;;  %v51_v10 = vld [vmem:[#allocation5 + $0x30] sm:$0xff]  ;;  %p269_p10 = scmp.ne.s32.totalorder %s153_s25, %s268_s26  ;;  %p274_p12 = scmp.lt.s32.totalorder %s268_s26, %s268_s26 }
  0x20   :  { %v50_v11 = vld [vmem:[#allocation5 + $0x28] sm:$0xff]  ;;  %v49_v12 = vld [vmem:[#allocation5 + $0x20] sm:$0xff]  ;;  %v48_v13 = vld [vmem:[#allocation5 + $0x18] sm:$0xff] }
  0x21   :  { %v47_v14 = vld [vmem:[#allocation5 + $0x10] sm:$0xff]  ;;  %v46_v15 = vld [vmem:[#allocation5 + $0x8] sm:$0xff]  ;;  %v45_v16 = vld [vmem:[#allocation5] sm:$0xff]  ;;  %p275_p13 = por %p274_p12, %p273_p11 }
  0x22   :  { %187 = vmatpush3.xpose.msra.mxu0 %v59_v1  ;;  %v44_v17 = vld [vmem:[#allocation2 + $0x8] sm:$0xff]  ;;  %v165_v18 = vld [vmem:[%s342_s2] ss:$0 sm:$0xff] }
  0x23   :  { %188 = vmatprep.subr.mxu0 %v58_v2  ;;  %p276_p0 = pnand %p275_p13, %p269_p10 }
  0x26   :  { %189 = vmatpush3.xpose.msra.mxu0 %v58_v2 }
  0x27   :  { %190 = vmatprep.subr.mxu0 %v57_v4 }
  0x2a   :  { %191 = vmatpush3.xpose.msra.mxu0 %v57_v4 }
  0x2b   :  { %192 = vmatprep.subr.mxu0 %v56_v5 }
  0x2e   :  { %193 = vmatpush3.xpose.msra.mxu0 %v56_v5 }
  0x2f   :  { %194 = vmatprep.subr.mxu0 %v55_v6 }
  0x32   :  { %195 = vmatpush3.xpose.msra.mxu0 %v55_v6 }
  0x33   :  { %196 = vmatprep.subr.mxu0 %v54_v7 }
  0x36   :  { %197 = vmatpush3.xpose.msra.mxu0 %v54_v7 }
  0x37   :  { %198 = vmatprep.subr.mxu0 %v53_v8 }
  0x3a   :  { %199 = vmatpush3.xpose.msra.mxu0 %v53_v8 }
  0x3b   :  { %200 = vmatprep.subr.mxu0 %v52_v9 }
  0x3e   :  { %201 = vmatpush3.xpose.msra.mxu0 %v52_v9 }
  0x3f   :  { %202 = vmatprep.subr.mxu0 %v51_v10 }
  0x42   :  { %203 = vmatpush3.xpose.msra.mxu0 %v51_v10 }
  0x43   :  { %204 = vmatprep.subr.mxu0 %v50_v11 }
  0x46   :  { %205 = vmatpush3.xpose.msra.mxu0 %v50_v11 }
  0x47   :  { %206 = vmatprep.subr.mxu0 %v49_v12 }
  0x4a   :  { %207 = vmatpush3.xpose.msra.mxu0 %v49_v12 }
  0x4b   :  { %208 = vmatprep.subr.mxu0 %v48_v13 }
  0x4e   :  { %209 = vmatpush3.xpose.msra.mxu0 %v48_v13 }
  0x4f   :  { %210 = vmatprep.subr.mxu0 %v47_v14 }
  0x52   :  { %211 = vmatpush3.xpose.msra.mxu0 %v47_v14 }
  0x53   :  { %212 = vmatprep.subr.mxu0 %v46_v15 }
  0x56   :  { %213 = vmatpush3.xpose.msra.mxu0 %v46_v15 }
  0x57   :  { %214 = vmatprep.subr.mxu0 %v45_v16 }
  0x5a   :  { %215 = vmatpush3.xpose.msra.mxu0 %v45_v16 }
  0x5d   :  { %217 = vmatmul.mubr.f32.vlgmr.msra.gmra.mxu0 %v44_v17 }
 0x11d   :  { %v218_v19 = vpop.f32.mrf.mxu0 }
 0x11e   :  { %v140_v20 = vadd.f32 %v218_v19, %v165_v18 }
 0x11f   :  { %v134_v21 = vpop.f32.mrf.mxu0 }
 0x120   :  { %224 = vtanh.f32 %v140_v20  ;;  %v135_v22 = vadd.f32 %v165_v18, %v134_v21 }
 0x122   :  { %226 = vtanh.f32 %v135_v22 }
 0x12d   :  { %v225_v23 = vpop.eup %224 }
 0x12e   :  { %146 = vst [vmem:[#allocation7 + $0x8] sm:$0xff] %v225_v23 }
 0x12f   :  { %v227_v24 = vpop.eup %226 }
 0x130   :  { %145 = vst [vmem:[#allocation7] sm:$0xff] %v227_v24 }
 0x131   :  { %279 = shalt.err (!%p276_p0)
}
 0x132   :  { %158 = dma.vmem_to_hbm [thread:$0]  %s153_s25, 256, %s343_s3, [#allocation4], %s295_s15, %s295_s15, %s296_s16  }
 0x133   :  { %292 = dma.done.wait [#allocation4], 256  }
 0x134   :  { %293 = vsyncadd [#allocation4], 4294967040 }
 0x135   :  { %162 = vsyncpa [#allocation3], 1 }
 0x136   :  { %163 = vsyncpa [#allocation6], 1 }
 0x137   :  { %164 = vsyncpa [#allocation4], 1 }

</bundles_post_ra>
